<compile_context>
chip_gen: v7x
topology: tpu7x:2x2x1
jax: 0.10.0
libtpu: 0.0.40
codegen_flags: <defaults>
</compile_context>

<pallas_src>
import jax
import jax.numpy as jnp
from jax.experimental import pallas as pl
from jax.experimental.pallas import tpu as pltpu

# ---- static module configuration (DepthConv1d.__init__ args) ----------------
C_IN = 8      # input_channel
H    = 16     # hidden_channel
K    = 3      # kernel
PAD  = 1      # padding
DIL  = 1      # dilation
SKIP = True

B  = 2
T  = 64                                   # per-batch length; B*T = 128 lanes
BT = B * T
T_OUT = T + 2 * PAD - DIL * (K - 1)       # depthwise-conv output length
EPS = 1e-8

# This kernel specializes to the "same-length" TCN configuration used by BASEN
# (2*padding == dilation*(kernel-1)), so the depthwise conv preserves length.
# TODO(synk): generalize the lane-folded layout to T_OUT != T configurations.
assert DIL * (K - 1) == 2 * PAD and T_OUT == T
assert (T & (T - 1)) == 0, "T must be a power of two for the shift/mask trick"
_T_SHIFT = T.bit_length() - 1

# Packed per-channel parameter columns (one (H, 6+K) array).
_B1, _G1, _BE1, _BD, _G2, _BE2, _WD0 = 0, 1, 2, 3, 4, 5, 6
NP = 6 + K


def _group_norm(v, batch_id, gamma, beta):
    """GroupNorm(1, H) applied independently to each batch segment of the
    lane-folded (H, B*T) value `v`, using one-pass statistics."""
    mean_l = jnp.zeros((1, BT), jnp.float32)
    inv_l = jnp.zeros((1, BT), jnp.float32)
    for b in range(B):                              # B is tiny and static
        seg = v[:, b * T:(b + 1) * T]               # (H, T) value slice
        m = jnp.mean(seg)
        var = jnp.mean(seg * seg) - m * m           # one-pass variance
        inv = jax.lax.rsqrt(var + EPS)
        sel = batch_id == b                         # (1, BT) lane mask
        mean_l = jnp.where(sel, m, mean_l)
        inv_l = jnp.where(sel, inv, inv_l)
    return (v - mean_l) * inv_l * gamma + beta


def depthconv1d_kernel(x_ref, w1_ref, hp_ref, wrs_ref, brs_ref, slopes_ref,
                       out_ref):
    # Per-lane bookkeeping: batch segment id and in-segment position.
    lane = jax.lax.broadcasted_iota(jnp.int32, (1, BT), 1)
    batch_id = lane >> _T_SHIFT
    pos = lane & (T - 1)

    # ---- conv1d (1x1 pointwise): (H, C_in) @ (C_in, B*T) + b ----------------
    y = jnp.dot(w1_ref[...], x_ref[...],
                preferred_element_type=jnp.float32) + hp_ref[:, _B1:_B1 + 1]

    # ---- PReLU 1 (single shared slope, read from SMEM) ----------------------
    a1 = slopes_ref[0]
    y = jnp.where(y > 0, y, a1 * y)

    # ---- GroupNorm(1, H), eps=1e-8, per batch segment -----------------------
    y = _group_norm(y, batch_id,
                    hp_ref[:, _G1:_G1 + 1], hp_ref[:, _BE1:_BE1 + 1])

    # ---- depthwise conv1d (groups=H), zero padding done in-vreg -------------
    # tap_k[:, t] = y[:, t + k*DIL - PAD] within each batch segment, else 0.
    z = jnp.zeros((H, BT), jnp.float32)
    for k in range(K):                               # small static unroll
        off = k * DIL - PAD
        if off == 0:
            tap = y
        else:
            # pltpu.roll == jnp.roll: roll(y, s)[:, t] = y[:, t - s]; s = -off.
            tap = pltpu.roll(y, (-off) % BT, 1)
            valid = (pos + off >= 0) & (pos + off < T)   # per-segment padding
            tap = jnp.where(valid, tap, 0.0)
        z = z + hp_ref[:, _WD0 + k:_WD0 + k + 1] * tap
    z = z + hp_ref[:, _BD:_BD + 1]

    # ---- PReLU 2 -------------------------------------------------------------
    a2 = slopes_ref[1]
    z = jnp.where(z > 0, z, a2 * z)

    # ---- GroupNorm(1, H), eps=1e-8 -------------------------------------------
    z = _group_norm(z, batch_id,
                    hp_ref[:, _G2:_G2 + 1], hp_ref[:, _BE2:_BE2 + 1])

    # ---- fused res_out / skip_out: one (2*C_in, H) @ (H, B*T) matmul ---------
    out_ref[...] = jnp.dot(wrs_ref[...], z,
                           preferred_element_type=jnp.float32) + brs_ref[...]


def depthconv1d(x, params):
    (w1, b1, a1, g1, be1, wd, bd, a2, g2, be2, wr, br, ws, bs) = params

    # Fold batch into the lane axis: (B, C, T) -> (C, B*T).
    xf = jnp.transpose(x, (1, 0, 2)).reshape(C_IN, BT)
    # Pack tiny per-channel params into one (H, 6+K) array.
    hp = jnp.concatenate([b1, g1, be1, bd, g2, be2, wd], axis=1)
    # Fuse res_out / skip_out weights and biases.
    wrs = jnp.concatenate([wr, ws], axis=0)          # (2*C_IN, H)
    brs = jnp.concatenate([br, bs], axis=0)          # (2*C_IN, 1)
    # PReLU slopes go to SMEM as scalars.
    slopes = jnp.concatenate([a1.reshape(-1), a2.reshape(-1)], axis=0)  # (2,)

    out = pl.pallas_call(
        depthconv1d_kernel,
        out_shape=jax.ShapeDtypeStruct((2 * C_IN, BT), jnp.float32),
        grid_spec=pltpu.PrefetchScalarGridSpec(
            num_scalar_prefetch=0,
            grid=(1,),
            in_specs=[
                pl.BlockSpec((C_IN, BT), lambda i: (0, 0)),       # x (folded)
                pl.BlockSpec((H, C_IN), lambda i: (0, 0)),        # w1
                pl.BlockSpec((H, NP), lambda i: (0, 0)),          # packed params
                pl.BlockSpec((2 * C_IN, H), lambda i: (0, 0)),    # [wr; ws]
                pl.BlockSpec((2 * C_IN, 1), lambda i: (0, 0)),    # [br; bs]
                pl.BlockSpec(memory_space=pltpu.MemorySpace.SMEM),  # slopes
            ],
            out_specs=pl.BlockSpec((2 * C_IN, BT), lambda i: (0, 0)),
        ),
        compiler_params=pltpu.CompilerParams(
            dimension_semantics=("arbitrary",)),
    )(xf, w1, hp, wrs, brs, slopes)

    # Unfold: (2*C_IN, B*T) -> (B, 2*C_IN, T) -> residual / skip.
    out = out.reshape(2 * C_IN, B, T).transpose(1, 0, 2)
    residual = out[:, :C_IN]
    skip = out[:, C_IN:]
    return residual, skip


def ref_forward(x, params):
    """Pure-JAX reference of the PyTorch forward (for correctness check)."""
    (w1, b1, a1, g1, be1, wd, bd, a2, g2, be2, wr, br, ws, bs) = params
    # conv1d 1x1
    y = jnp.einsum('hc,bct->bht', w1, x) + b1[None]
    # PReLU 1
    y = jnp.where(y > 0, y, a1[0, 0] * y)
    # GroupNorm(1, H)
    m = y.mean(axis=(1, 2), keepdims=True)
    v = ((y - m) ** 2).mean(axis=(1, 2), keepdims=True)
    y = (y - m) / jnp.sqrt(v + EPS) * g1[None] + be1[None]
    # depthwise conv
    yp = jnp.pad(y, ((0, 0), (0, 0), (PAD, PAD)))
    z = jnp.zeros((B, H, T_OUT), jnp.float32)
    for k in range(K):
        z = z + wd[None, :, k:k + 1] * yp[:, :, k * DIL:k * DIL + T_OUT]
    z = z + bd[None]
    # PReLU 2
    z = jnp.where(z > 0, z, a2[0, 0] * z)
    # GroupNorm(1, H)
    m = z.mean(axis=(1, 2), keepdims=True)
    v = ((z - m) ** 2).mean(axis=(1, 2), keepdims=True)
    z = (z - m) / jnp.sqrt(v + EPS) * g2[None] + be2[None]
    residual = jnp.einsum('ch,bht->bct', wr, z) + br[None]
    skip = jnp.einsum('ch,bht->bct', ws, z) + bs[None]
    return residual, skip


if __name__ == "__main__":
    key = jax.random.PRNGKey(0)
    ks = jax.random.split(key, 16)

    x = jax.random.normal(ks[0], (B, C_IN, T), jnp.float32)

    # Deterministic synthetic parameters (shapes per nn.Module.__init__).
    w1  = jax.random.normal(ks[1], (H, C_IN), jnp.float32) * 0.2   # conv1d.weight (H,C_in,1)
    b1  = jax.random.normal(ks[2], (H, 1), jnp.float32) * 0.1      # conv1d.bias
    a1  = jnp.full((1, 1), 0.25, jnp.float32)                      # PReLU 1 slope
    g1  = jax.random.normal(ks[3], (H, 1), jnp.float32) * 0.1 + 1. # reg1.weight
    be1 = jax.random.normal(ks[4], (H, 1), jnp.float32) * 0.1      # reg1.bias
    wd  = jax.random.normal(ks[5], (H, K), jnp.float32) * 0.3      # dconv1d.weight (H,1,K)
    bd  = jax.random.normal(ks[6], (H, 1), jnp.float32) * 0.1      # dconv1d.bias
    a2  = jnp.full((1, 1), 0.25, jnp.float32)                      # PReLU 2 slope
    g2  = jax.random.normal(ks[7], (H, 1), jnp.float32) * 0.1 + 1. # reg2.weight
    be2 = jax.random.normal(ks[8], (H, 1), jnp.float32) * 0.1      # reg2.bias
    wr  = jax.random.normal(ks[9], (C_IN, H), jnp.float32) * 0.2   # res_out.weight
    br  = jax.random.normal(ks[10], (C_IN, 1), jnp.float32) * 0.1  # res_out.bias
    ws  = jax.random.normal(ks[11], (C_IN, H), jnp.float32) * 0.2  # skip_out.weight
    bs  = jax.random.normal(ks[12], (C_IN, 1), jnp.float32) * 0.1  # skip_out.bias

    params = (w1, b1, a1, g1, be1, wd, bd, a2, g2, be2, wr, br, ws, bs)

    residual, skip = depthconv1d(x, params)
    jax.block_until_ready((residual, skip))

    res_ref, skip_ref = ref_forward(x, params)
    assert jnp.allclose(residual, res_ref, rtol=1e-4, atol=1e-4), \
        float(jnp.max(jnp.abs(residual - res_ref)))
    assert jnp.allclose(skip, skip_ref, rtol=1e-4, atol=1e-4), \
        float(jnp.max(jnp.abs(skip - skip_ref)))

    print("KERNEL_OK")
</pallas_src>

<mosaic_0001>
module attributes {stable_mosaic.version = 11 : i64} {
  func.func @depthconv1d_kernel(%arg0: i32, %arg1: memref<8x128xf32, #tpu.memory_space<vmem>>, %arg2: memref<16x8xf32, #tpu.memory_space<vmem>>, %arg3: memref<16x9xf32, #tpu.memory_space<vmem>>, %arg4: memref<16x16xf32, #tpu.memory_space<vmem>>, %arg5: memref<16x1xf32, #tpu.memory_space<vmem>>, %arg6: memref<2xf32, #tpu.memory_space<smem>>, %arg7: memref<16x128xf32, #tpu.memory_space<vmem>>) attributes {dimension_semantics = [#tpu.dimension_semantics<arbitrary>], iteration_bounds = array<i64: 1>, scalar_prefetch = 0 : i64, scratch_operands = 0 : i64, tpu.core_type = #tpu.core_type<tc>, window_params = [{pipeline_mode = #tpu.pipeline_mode<synchronous>, transform_indices = @transform_0, window_bounds = array<i64: 8, 128>}, {pipeline_mode = #tpu.pipeline_mode<synchronous>, transform_indices = @transform_1, window_bounds = array<i64: 16, 8>}, {pipeline_mode = #tpu.pipeline_mode<synchronous>, transform_indices = @transform_2, window_bounds = array<i64: 16, 9>}, {pipeline_mode = #tpu.pipeline_mode<synchronous>, transform_indices = @transform_3, window_bounds = array<i64: 16, 16>}, {pipeline_mode = #tpu.pipeline_mode<synchronous>, transform_indices = @transform_4, window_bounds = array<i64: 16, 1>}, {transform_indices = @transform_5, window_bounds = array<i64: 2>}, {pipeline_mode = #tpu.pipeline_mode<synchronous>, transform_indices = @transform_6, window_bounds = array<i64: 16, 128>}]} {
    %0 = tpu.iota {dimensions = array<i32: 1>} : vector<1x128xi32>
    %c6_i32 = arith.constant 6 : i32
    %1 = vector.broadcast %c6_i32 : i32 to vector<1x128xi32>
    %2 = arith.shrsi %0, %1 : vector<1x128xi32>
    %c63_i32 = arith.constant 63 : i32
    %3 = vector.broadcast %c63_i32 : i32 to vector<1x128xi32>
    %4 = arith.andi %0, %3 : vector<1x128xi32>
    %c0 = arith.constant 0 : index
    %c0_0 = arith.constant 0 : index
    %5 = vector.load %arg2[%c0, %c0_0] : memref<16x8xf32, #tpu.memory_space<vmem>>, vector<16x8xf32>
    %c0_1 = arith.constant 0 : index
    %c0_2 = arith.constant 0 : index
    %6 = vector.load %arg1[%c0_1, %c0_2] : memref<8x128xf32, #tpu.memory_space<vmem>>, vector<8x128xf32>
    %cst = arith.constant dense<0.000000e+00> : vector<16x128xf32>
    %7 = tpu.matmul %5, %6, %cst {dimension_numbers = #tpu.dot_dimension_numbers<[1], [0], [0], [1], [0, 0, 1, 1], [], []>} : vector<16x8xf32>, vector<8x128xf32>, vector<16x128xf32> -> vector<16x128xf32>
    %c0_3 = arith.constant 0 : index
    %c0_4 = arith.constant 0 : index
    %8 = vector.load %arg3[%c0_3, %c0_4] : memref<16x9xf32, #tpu.memory_space<vmem>>, vector<16x1xf32>
    %9 = vector.broadcast %8 : vector<16x1xf32> to vector<16x128xf32>
    %10 = arith.addf %7, %9 : vector<16x128xf32>
    %c0_5 = arith.constant 0 : index
    %11 = memref.load %arg6[%c0_5] : memref<2xf32, #tpu.memory_space<smem>>
    %cst_6 = arith.constant 0.000000e+00 : f32
    %12 = vector.broadcast %cst_6 : f32 to vector<16x128xf32>
    %13 = arith.cmpf ogt, %10, %12 : vector<16x128xf32>
    %14 = vector.broadcast %11 : f32 to vector<16x128xf32>
    %15 = arith.mulf %14, %10 : vector<16x128xf32>
    %16 = arith.select %13, %10, %15 : vector<16x128xi1>, vector<16x128xf32>
    %c0_7 = arith.constant 0 : index
    %c1 = arith.constant 1 : index
    %17 = vector.load %arg3[%c0_7, %c1] : memref<16x9xf32, #tpu.memory_space<vmem>>, vector<16x1xf32>
    %c0_8 = arith.constant 0 : index
    %c2 = arith.constant 2 : index
    %18 = vector.load %arg3[%c0_8, %c2] : memref<16x9xf32, #tpu.memory_space<vmem>>, vector<16x1xf32>
    %cst_9 = arith.constant 0.000000e+00 : f32
    %19 = vector.broadcast %cst_9 : f32 to vector<1x128xf32>
    %cst_10 = arith.constant 0.000000e+00 : f32
    %20 = vector.broadcast %cst_10 : f32 to vector<1x128xf32>
    %21 = vector.extract_strided_slice %16 {offsets = [0, 0], sizes = [16, 64], strides = [1, 1]} : vector<16x128xf32> to vector<16x64xf32>
    %22 = vector.shape_cast %21 : vector<16x64xf32> to vector<1x16x64xf32>
    %cst_11 = arith.constant dense<0.000000e+00> : vector<1xf32>
    %23 = vector.multi_reduction <add>, %22, %cst_11 [1, 2] : vector<1x16x64xf32> to vector<1xf32>
    %24 = vector.shape_cast %23 : vector<1xf32> to vector<1x1x1xf32>
    %25 = vector.extract %24[0, 0, 0] : f32 from vector<1x1x1xf32>
    %cst_12 = arith.constant 1.024000e+03 : f32
    %26 = arith.divf %25, %cst_12 : f32
    %27 = arith.mulf %21, %21 : vector<16x64xf32>
    %28 = vector.shape_cast %27 : vector<16x64xf32> to vector<1x16x64xf32>
    %cst_13 = arith.constant dense<0.000000e+00> : vector<1xf32>
    %29 = vector.multi_reduction <add>, %28, %cst_13 [1, 2] : vector<1x16x64xf32> to vector<1xf32>
    %30 = vector.shape_cast %29 : vector<1xf32> to vector<1x1x1xf32>
    %31 = vector.extract %30[0, 0, 0] : f32 from vector<1x1x1xf32>
    %cst_14 = arith.constant 1.024000e+03 : f32
    %32 = arith.divf %31, %cst_14 : f32
    %33 = arith.mulf %26, %26 : f32
    %34 = arith.subf %32, %33 : f32
    %cst_15 = arith.constant 9.99999993E-9 : f32
    %35 = arith.addf %34, %cst_15 : f32
    %36 = math.rsqrt %35 : f32
    %c0_i32 = arith.constant 0 : i32
    %37 = vector.broadcast %c0_i32 : i32 to vector<1x128xi32>
    %38 = arith.cmpi eq, %2, %37 : vector<1x128xi32>
    %39 = vector.broadcast %26 : f32 to vector<1x128xf32>
    %40 = arith.select %38, %39, %19 : vector<1x128xi1>, vector<1x128xf32>
    %41 = vector.broadcast %36 : f32 to vector<1x128xf32>
    %42 = arith.select %38, %41, %20 : vector<1x128xi1>, vector<1x128xf32>
    %43 = vector.extract_strided_slice %16 {offsets = [0, 64], sizes = [16, 64], strides = [1, 1]} : vector<16x128xf32> to vector<16x64xf32>
    %44 = vector.shape_cast %43 : vector<16x64xf32> to vector<1x16x64xf32>
    %cst_16 = arith.constant dense<0.000000e+00> : vector<1xf32>
    %45 = vector.multi_reduction <add>, %44, %cst_16 [1, 2] : vector<1x16x64xf32> to vector<1xf32>
    %46 = vector.shape_cast %45 : vector<1xf32> to vector<1x1x1xf32>
    %47 = vector.extract %46[0, 0, 0] : f32 from vector<1x1x1xf32>
    %cst_17 = arith.constant 1.024000e+03 : f32
    %48 = arith.divf %47, %cst_17 : f32
    %49 = arith.mulf %43, %43 : vector<16x64xf32>
    %50 = vector.shape_cast %49 : vector<16x64xf32> to vector<1x16x64xf32>
    %cst_18 = arith.constant dense<0.000000e+00> : vector<1xf32>
    %51 = vector.multi_reduction <add>, %50, %cst_18 [1, 2] : vector<1x16x64xf32> to vector<1xf32>
    %52 = vector.shape_cast %51 : vector<1xf32> to vector<1x1x1xf32>
    %53 = vector.extract %52[0, 0, 0] : f32 from vector<1x1x1xf32>
    %cst_19 = arith.constant 1.024000e+03 : f32
    %54 = arith.divf %53, %cst_19 : f32
    %55 = arith.mulf %48, %48 : f32
    %56 = arith.subf %54, %55 : f32
    %cst_20 = arith.constant 9.99999993E-9 : f32
    %57 = arith.addf %56, %cst_20 : f32
    %58 = math.rsqrt %57 : f32
    %c1_i32 = arith.constant 1 : i32
    %59 = vector.broadcast %c1_i32 : i32 to vector<1x128xi32>
    %60 = arith.cmpi eq, %2, %59 : vector<1x128xi32>
    %61 = vector.broadcast %48 : f32 to vector<1x128xf32>
    %62 = arith.select %60, %61, %40 : vector<1x128xi1>, vector<1x128xf32>
    %63 = vector.broadcast %58 : f32 to vector<1x128xf32>
    %64 = arith.select %60, %63, %42 : vector<1x128xi1>, vector<1x128xf32>
    %65 = vector.broadcast %62 : vector<1x128xf32> to vector<16x128xf32>
    %66 = arith.subf %16, %65 : vector<16x128xf32>
    %67 = vector.broadcast %64 : vector<1x128xf32> to vector<16x128xf32>
    %68 = arith.mulf %66, %67 : vector<16x128xf32>
    %69 = vector.broadcast %17 : vector<16x1xf32> to vector<16x128xf32>
    %70 = arith.mulf %68, %69 : vector<16x128xf32>
    %71 = vector.broadcast %18 : vector<16x1xf32> to vector<16x128xf32>
    %72 = arith.addf %70, %71 : vector<16x128xf32>
    %cst_21 = arith.constant 0.000000e+00 : f32
    %73 = vector.broadcast %cst_21 : f32 to vector<16x128xf32>
    %c1_i32_22 = arith.constant 1 : i32
    %74 = tpu.dynamic_rotate %72 by %c1_i32_22 dim 1 : vector<16x128xf32>, i32 -> vector<16x128xf32>
    %c-1_i32 = arith.constant -1 : i32
    %75 = vector.broadcast %c-1_i32 : i32 to vector<1x128xi32>
    %76 = arith.addi %4, %75 : vector<1x128xi32>
    %c0_i32_23 = arith.constant 0 : i32
    %77 = vector.broadcast %c0_i32_23 : i32 to vector<1x128xi32>
    %78 = arith.cmpi sge, %76, %77 : vector<1x128xi32>
    %c-1_i32_24 = arith.constant -1 : i32
    %79 = vector.broadcast %c-1_i32_24 : i32 to vector<1x128xi32>
    %80 = arith.addi %4, %79 : vector<1x128xi32>
    %c64_i32 = arith.constant 64 : i32
    %81 = vector.broadcast %c64_i32 : i32 to vector<1x128xi32>
    %82 = arith.cmpi slt, %80, %81 : vector<1x128xi32>
    %83 = arith.andi %78, %82 : vector<1x128xi1>
    %cst_25 = arith.constant 0.000000e+00 : f32
    %84 = vector.shape_cast %83 : vector<1x128xi1> to vector<1x128xi1>
    %85 = vector.broadcast %84 : vector<1x128xi1> to vector<16x128xi1>
    %86 = vector.broadcast %cst_25 : f32 to vector<16x128xf32>
    %87 = arith.select %85, %74, %86 : vector<16x128xi1>, vector<16x128xf32>
    %c0_26 = arith.constant 0 : index
    %c6 = arith.constant 6 : index
    %88 = vector.load %arg3[%c0_26, %c6] : memref<16x9xf32, #tpu.memory_space<vmem>>, vector<16x1xf32>
    %89 = vector.broadcast %88 : vector<16x1xf32> to vector<16x128xf32>
    %90 = arith.mulf %89, %87 : vector<16x128xf32>
    %91 = arith.addf %73, %90 : vector<16x128xf32>
    %c0_27 = arith.constant 0 : index
    %c7 = arith.constant 7 : index
    %92 = vector.load %arg3[%c0_27, %c7] : memref<16x9xf32, #tpu.memory_space<vmem>>, vector<16x1xf32>
    %93 = vector.broadcast %92 : vector<16x1xf32> to vector<16x128xf32>
    %94 = arith.mulf %93, %72 : vector<16x128xf32>
    %95 = arith.addf %91, %94 : vector<16x128xf32>
    %c127_i32 = arith.constant 127 : i32
    %96 = tpu.dynamic_rotate %72 by %c127_i32 dim 1 : vector<16x128xf32>, i32 -> vector<16x128xf32>
    %c1_i32_28 = arith.constant 1 : i32
    %97 = vector.broadcast %c1_i32_28 : i32 to vector<1x128xi32>
    %98 = arith.addi %4, %97 : vector<1x128xi32>
    %c0_i32_29 = arith.constant 0 : i32
    %99 = vector.broadcast %c0_i32_29 : i32 to vector<1x128xi32>
    %100 = arith.cmpi sge, %98, %99 : vector<1x128xi32>
    %c1_i32_30 = arith.constant 1 : i32
    %101 = vector.broadcast %c1_i32_30 : i32 to vector<1x128xi32>
    %102 = arith.addi %4, %101 : vector<1x128xi32>
    %c64_i32_31 = arith.constant 64 : i32
    %103 = vector.broadcast %c64_i32_31 : i32 to vector<1x128xi32>
    %104 = arith.cmpi slt, %102, %103 : vector<1x128xi32>
    %105 = arith.andi %100, %104 : vector<1x128xi1>
    %cst_32 = arith.constant 0.000000e+00 : f32
    %106 = vector.shape_cast %105 : vector<1x128xi1> to vector<1x128xi1>
    %107 = vector.broadcast %106 : vector<1x128xi1> to vector<16x128xi1>
    %108 = vector.broadcast %cst_32 : f32 to vector<16x128xf32>
    %109 = arith.select %107, %96, %108 : vector<16x128xi1>, vector<16x128xf32>
    %c0_33 = arith.constant 0 : index
    %c8 = arith.constant 8 : index
    %110 = vector.load %arg3[%c0_33, %c8] : memref<16x9xf32, #tpu.memory_space<vmem>>, vector<16x1xf32>
    %111 = vector.broadcast %110 : vector<16x1xf32> to vector<16x128xf32>
    %112 = arith.mulf %111, %109 : vector<16x128xf32>
    %113 = arith.addf %95, %112 : vector<16x128xf32>
    %c0_34 = arith.constant 0 : index
    %c3 = arith.constant 3 : index
    %114 = vector.load %arg3[%c0_34, %c3] : memref<16x9xf32, #tpu.memory_space<vmem>>, vector<16x1xf32>
    %115 = vector.broadcast %114 : vector<16x1xf32> to vector<16x128xf32>
    %116 = arith.addf %113, %115 : vector<16x128xf32>
    %c1_35 = arith.constant 1 : index
    %117 = memref.load %arg6[%c1_35] : memref<2xf32, #tpu.memory_space<smem>>
    %cst_36 = arith.constant 0.000000e+00 : f32
    %118 = vector.broadcast %cst_36 : f32 to vector<16x128xf32>
    %119 = arith.cmpf ogt, %116, %118 : vector<16x128xf32>
    %120 = vector.broadcast %117 : f32 to vector<16x128xf32>
    %121 = arith.mulf %120, %116 : vector<16x128xf32>
    %122 = arith.select %119, %116, %121 : vector<16x128xi1>, vector<16x128xf32>
    %c0_37 = arith.constant 0 : index
    %c4 = arith.constant 4 : index
    %123 = vector.load %arg3[%c0_37, %c4] : memref<16x9xf32, #tpu.memory_space<vmem>>, vector<16x1xf32>
    %c0_38 = arith.constant 0 : index
    %c5 = arith.constant 5 : index
    %124 = vector.load %arg3[%c0_38, %c5] : memref<16x9xf32, #tpu.memory_space<vmem>>, vector<16x1xf32>
    %cst_39 = arith.constant 0.000000e+00 : f32
    %125 = vector.broadcast %cst_39 : f32 to vector<1x128xf32>
    %cst_40 = arith.constant 0.000000e+00 : f32
    %126 = vector.broadcast %cst_40 : f32 to vector<1x128xf32>
    %127 = vector.extract_strided_slice %122 {offsets = [0, 0], sizes = [16, 64], strides = [1, 1]} : vector<16x128xf32> to vector<16x64xf32>
    %128 = vector.shape_cast %127 : vector<16x64xf32> to vector<1x16x64xf32>
    %cst_41 = arith.constant dense<0.000000e+00> : vector<1xf32>
    %129 = vector.multi_reduction <add>, %128, %cst_41 [1, 2] : vector<1x16x64xf32> to vector<1xf32>
    %130 = vector.shape_cast %129 : vector<1xf32> to vector<1x1x1xf32>
    %131 = vector.extract %130[0, 0, 0] : f32 from vector<1x1x1xf32>
    %cst_42 = arith.constant 1.024000e+03 : f32
    %132 = arith.divf %131, %cst_42 : f32
    %133 = arith.mulf %127, %127 : vector<16x64xf32>
    %134 = vector.shape_cast %133 : vector<16x64xf32> to vector<1x16x64xf32>
    %cst_43 = arith.constant dense<0.000000e+00> : vector<1xf32>
    %135 = vector.multi_reduction <add>, %134, %cst_43 [1, 2] : vector<1x16x64xf32> to vector<1xf32>
    %136 = vector.shape_cast %135 : vector<1xf32> to vector<1x1x1xf32>
    %137 = vector.extract %136[0, 0, 0] : f32 from vector<1x1x1xf32>
    %cst_44 = arith.constant 1.024000e+03 : f32
    %138 = arith.divf %137, %cst_44 : f32
    %139 = arith.mulf %132, %132 : f32
    %140 = arith.subf %138, %139 : f32
    %cst_45 = arith.constant 9.99999993E-9 : f32
    %141 = arith.addf %140, %cst_45 : f32
    %142 = math.rsqrt %141 : f32
    %c0_i32_46 = arith.constant 0 : i32
    %143 = vector.broadcast %c0_i32_46 : i32 to vector<1x128xi32>
    %144 = arith.cmpi eq, %2, %143 : vector<1x128xi32>
    %145 = vector.broadcast %132 : f32 to vector<1x128xf32>
    %146 = arith.select %144, %145, %125 : vector<1x128xi1>, vector<1x128xf32>
    %147 = vector.broadcast %142 : f32 to vector<1x128xf32>
    %148 = arith.select %144, %147, %126 : vector<1x128xi1>, vector<1x128xf32>
    %149 = vector.extract_strided_slice %122 {offsets = [0, 64], sizes = [16, 64], strides = [1, 1]} : vector<16x128xf32> to vector<16x64xf32>
    %150 = vector.shape_cast %149 : vector<16x64xf32> to vector<1x16x64xf32>
    %cst_47 = arith.constant dense<0.000000e+00> : vector<1xf32>
    %151 = vector.multi_reduction <add>, %150, %cst_47 [1, 2] : vector<1x16x64xf32> to vector<1xf32>
    %152 = vector.shape_cast %151 : vector<1xf32> to vector<1x1x1xf32>
    %153 = vector.extract %152[0, 0, 0] : f32 from vector<1x1x1xf32>
    %cst_48 = arith.constant 1.024000e+03 : f32
    %154 = arith.divf %153, %cst_48 : f32
    %155 = arith.mulf %149, %149 : vector<16x64xf32>
    %156 = vector.shape_cast %155 : vector<16x64xf32> to vector<1x16x64xf32>
    %cst_49 = arith.constant dense<0.000000e+00> : vector<1xf32>
    %157 = vector.multi_reduction <add>, %156, %cst_49 [1, 2] : vector<1x16x64xf32> to vector<1xf32>
    %158 = vector.shape_cast %157 : vector<1xf32> to vector<1x1x1xf32>
    %159 = vector.extract %158[0, 0, 0] : f32 from vector<1x1x1xf32>
    %cst_50 = arith.constant 1.024000e+03 : f32
    %160 = arith.divf %159, %cst_50 : f32
    %161 = arith.mulf %154, %154 : f32
    %162 = arith.subf %160, %161 : f32
    %cst_51 = arith.constant 9.99999993E-9 : f32
    %163 = arith.addf %162, %cst_51 : f32
    %164 = math.rsqrt %163 : f32
    %c1_i32_52 = arith.constant 1 : i32
    %165 = vector.broadcast %c1_i32_52 : i32 to vector<1x128xi32>
    %166 = arith.cmpi eq, %2, %165 : vector<1x128xi32>
    %167 = vector.broadcast %154 : f32 to vector<1x128xf32>
    %168 = arith.select %166, %167, %146 : vector<1x128xi1>, vector<1x128xf32>
    %169 = vector.broadcast %164 : f32 to vector<1x128xf32>
    %170 = arith.select %166, %169, %148 : vector<1x128xi1>, vector<1x128xf32>
    %171 = vector.broadcast %168 : vector<1x128xf32> to vector<16x128xf32>
    %172 = arith.subf %122, %171 : vector<16x128xf32>
    %173 = vector.broadcast %170 : vector<1x128xf32> to vector<16x128xf32>
    %174 = arith.mulf %172, %173 : vector<16x128xf32>
    %175 = vector.broadcast %123 : vector<16x1xf32> to vector<16x128xf32>
    %176 = arith.mulf %174, %175 : vector<16x128xf32>
    %177 = vector.broadcast %124 : vector<16x1xf32> to vector<16x128xf32>
    %178 = arith.addf %176, %177 : vector<16x128xf32>
    %c0_53 = arith.constant 0 : index
    %c0_54 = arith.constant 0 : index
    %179 = vector.load %arg4[%c0_53, %c0_54] : memref<16x16xf32, #tpu.memory_space<vmem>>, vector<16x16xf32>
    %cst_55 = arith.constant dense<0.000000e+00> : vector<16x128xf32>
    %180 = tpu.matmul %179, %178, %cst_55 {dimension_numbers = #tpu.dot_dimension_numbers<[1], [0], [0], [1], [0, 0, 1, 1], [], []>} : vector<16x16xf32>, vector<16x128xf32>, vector<16x128xf32> -> vector<16x128xf32>
    %c0_56 = arith.constant 0 : index
    %c0_57 = arith.constant 0 : index
    %181 = vector.load %arg5[%c0_56, %c0_57] : memref<16x1xf32, #tpu.memory_space<vmem>>, vector<16x1xf32>
    %182 = vector.broadcast %181 : vector<16x1xf32> to vector<16x128xf32>
    %183 = arith.addf %180, %182 : vector<16x128xf32>
    %c0_58 = arith.constant 0 : index
    %c0_59 = arith.constant 0 : index
    %184 = vector.load %arg7[%c0_58, %c0_59] : memref<16x128xf32, #tpu.memory_space<vmem>>, vector<16x128xf32>
    tpu.vector_store %arg7[%c0_58, %c0_59], %183 {strides = array<i32>} : memref<16x128xf32, #tpu.memory_space<vmem>>, vector<16x128xf32>,
    return
  }
  func.func @transform_0(%arg0: i32) -> (i32, i32) {
    %c0_i32 = arith.constant 0 : i32
    %c0_i32_0 = arith.constant 0 : i32
    %c0_i32_1 = arith.constant 0 : i32
    return %c0_i32, %c0_i32_0 : i32, i32
  }
  func.func @transform_1(%arg0: i32) -> (i32, i32) {
    %c0_i32 = arith.constant 0 : i32
    %c0_i32_0 = arith.constant 0 : i32
    %c0_i32_1 = arith.constant 0 : i32
    return %c0_i32, %c0_i32_0 : i32, i32
  }
  func.func @transform_2(%arg0: i32) -> (i32, i32) {
    %c0_i32 = arith.constant 0 : i32
    %c0_i32_0 = arith.constant 0 : i32
    %c0_i32_1 = arith.constant 0 : i32
    return %c0_i32, %c0_i32_0 : i32, i32
  }
  func.func @transform_3(%arg0: i32) -> (i32, i32) {
    %c0_i32 = arith.constant 0 : i32
    %c0_i32_0 = arith.constant 0 : i32
    %c0_i32_1 = arith.constant 0 : i32
    return %c0_i32, %c0_i32_0 : i32, i32
  }
  func.func @transform_4(%arg0: i32) -> (i32, i32) {
    %c0_i32 = arith.constant 0 : i32
    %c0_i32_0 = arith.constant 0 : i32
    %c0_i32_1 = arith.constant 0 : i32
    return %c0_i32, %c0_i32_0 : i32, i32
  }
  func.func @transform_5(%arg0: i32) -> i32 {
    %c0_i32 = arith.constant 0 : i32
    %c0_i32_0 = arith.constant 0 : i32
    return %c0_i32 : i32
  }
  func.func @transform_6(%arg0: i32) -> (i32, i32) {
    %c0_i32 = arith.constant 0 : i32
    %c0_i32_0 = arith.constant 0 : i32
    %c0_i32_1 = arith.constant 0 : i32
    return %c0_i32, %c0_i32_0 : i32, i32
  }
}

</mosaic_0001>

<bundles_post_ra>
// kernel: tpu_custom_call.1
= control target key start
LH: loop header
LB: loop body
LE: loop exit
PB: predicated region body
PF: predicated region fallthrough
CT: control target
= control target key end

     0   :  { %11 = vsyncpa [#allocation4], 0  ;;  %s919_s0 = inlined_call_operand.vmem [shape: f32[8,128], index: 0, kind: input, shape index: {}]   ;;  %s920_s1 = inlined_call_operand.vmem [shape: f32[16,8], index: 1, kind: input, shape index: {}]   ;;  %s921_s2 = inlined_call_operand.vmem [shape: f32[16,9], index: 2, kind: input, shape index: {}]   ;;  %s922_s3 = inlined_call_operand.vmem [shape: f32[16,16], index: 3, kind: input, shape index: {}]   ;;  %s923_s4 = inlined_call_operand.vmem [shape: f32[16,1], index: 4, kind: input, shape index: {}]   ;;  %s924_s5 = inlined_call_operand.vmem [shape: f32[2], index: 5, kind: input, shape index: {}]   ;;  %s925_s6 = inlined_call_operand.hbm [shape: f32[16,128], index: 6, kind: output, shape index: {}]  }
   0x1   :  { %12 = vsyncpa [#allocation3], 0  ;;  %s29_s23 = sshll.u32 %s924_s5, 4  ;;  %s30_s23 = int_to_ptr.vmem [resolvable:$true] %s29_s23 }
   0x2   :  { %s677_s24 = scalar_lea.vmem %s30_s23, 16  ;;  %p682_p1 = scmp.lt.s32.totalorder %s30_s23, %s30_s23 }
   0x3   :  { %p678_p0 = scmp.ne.s32.totalorder %s30_s23, %s677_s24  ;;  %p683_p2 = scmp.lt.s32.totalorder %s677_s24, %s677_s24 }
   0x5   :  { %p684_p3 = por %p683_p2, %p682_p1 }
   0x7   :  { %p685_p4 = pnand %p684_p3, %p678_p0 }
   0x9   :  { %688 = shalt.err (!%p685_p4)
}
   0xa   :  { %s715_s25 = smov [#allocation2]  }
   0xb   :  { %32 = dma.vmem_to_smem %s30_s23, 16, %s715_s25, [#allocation4]  }
   0xc   :  { %711 = dma.done.wait [#allocation4], 16  }
   0xd   :  { %712 = vsyncadd [#allocation4], 4294967280 }
   0xe   :  { %36 = sfence }
   0xf   :  { %v43_v0 = vld [vmem:[%s919_s0] sm:$0xff]  ;;  %vm56_vm0 = vcmask 64512   ;;  %v42_v2 = vld [vmem:[%s920_s1 + $0x8] sm:$0xff]  ;;  %v716_v4 = vmov 0   ;;  %vm146_vm2 = vcmask 523264   ;;  %v718_v44 = vmov 1  }
  0x10   :  { %v41_v1 = vld [vmem:[%s920_s1] sm:$0xff]  ;;  %598 = vmatprep.subr.mxu0 %v43_v0  ;;  %654 = vset.pattern.permute.xlu0 %v716_v4  ;;  %v788_v5 = vld [vmem:[%s921_s2 + $0x8] sm:$0xff]  ;;  %s138_s1 = sld [smem:[#allocation2]]  ;;  %v719_v49 = vmov 2   ;;  %v720_v51 = vmov 6   ;;  %v721_v52 = vmov 7  }
  0x11   :  { %600 = vmatprep.mubr.msk.f32.mxu0 %vm56_vm0, %v41_v1  ;;  %v781_v3 = vld [vmem:[%s921_s2] sm:$0xff]  ;;  %599 = vmatpush3.msra.mxu0 %v43_v0  ;;  %s717_s2 = smov 64   ;;  %v722_v55 = vmov 8   ;;  %v723_v56 = vmov 3   ;;  %s724_s26 = smov 1   ;;  %vm485_vm10 = vcmask 130048  }
  0x12   :  { %601 = vmatmul.mubr.msk.f32.vlgmr.msra.gmra.mrb[0].mxu0 %vm56_vm0, %v42_v2  ;;  %48 = vperm.xlu0 %654, %v781_v3   ;;  %s725_s27 = smov 127   ;;  %s588_s28 = sld [smem:[#allocation2 + $0x1]] }
  0x13   :  { %656 = vset.pattern.permute.xlu1 %v718_v44 }
  0x16   :  { %53 = vperm.xlu0 %654, %v788_v5   ;;  %v141_v9 = vstv %s138_s1 }
  0x1a   :  { %655 = vset.pattern.permute.xlu0 %v718_v44 }
  0x91   :  { %v49_v6 = vpop.permute.xlu0 %48 }
  0x95   :  { %v54_v7 = vpop.permute.xlu0 %53 }
  0xe5   :  { %v602_v8 = vpop.f32.mrb[0].mxu0 }
  0xe6   :  { %v135_v10 = vadd.f32 %v602_v8, %v54_v7  ;;  %v129_v11 = vpop.f32.mrb[1].mxu0 }
  0xe7   :  { %v130_v12 = vadd.f32 %v129_v11, %v49_v6 }
  0xe8   :  { %vm140_vm1 = vcmp.gt.f32.partialorder %v135_v10, 0.0  ;;  %v143_v13 = vmul.f32 %v141_v9, %v135_v10 }
  0xe9   :  { %vm139_vm3 = vcmp.gt.f32.partialorder %v130_v12, 0.0  ;;  %v142_v14 = vmul.f32 %v141_v9, %v130_v12 }
  0xea   :  { %v791_v15 = vsel %vm140_vm1, %v135_v10, %v143_v13  ;;  %v37_v10 = vlaneseq  ;;  %v472_v13 = vld [vmem:[%s922_s3 + $0x8] sm:$0xff] }
  0xeb   :  { %v793_v16 = vsel %vm139_vm3, %v130_v12, %v142_v14  ;;  %v148_v17 = vsel %vm146_vm2, %v791_v15, 0.0  ;;  %v163_v18 = vmul.f32 %v791_v15, %v791_v15 }
  0xec   :  { %192 = vrot.lane.b32.xlu0 %v793_v16, %s717_s2  ;;  %v147_v19 = vsel %vm146_vm2, %v793_v16, 0.0  ;;  %v162_v20 = vmul.f32 %v793_v16, %v793_v16  ;;  %v38_v11 = vand.u32 127, %v37_v10 }
  0xed   :  { %v149_v21 = vadd.f32 %v148_v17, %v147_v19  ;;  %v165_v23 = vsel %vm146_vm2, %v163_v18, 0.0 }
  0xee   :  { %v164_v22 = vsel %vm146_vm2, %v162_v20, 0.0  ;;  %v39_v12 = vshra.s32 %v38_v11, 6 }
  0xef   :  { %150 = vadd.xlane.f32.xlu1 %v149_v21  ;;  %v166_v24 = vadd.f32 %v165_v23, %v164_v22 }
  0xf0   :  { %215 = vrot.lane.b32.xlu0 %v162_v20, %s717_s2  ;;  %vm831_vm4 = vcmp.eq.s32.totalorder %v39_v12, 0  ;;  %vm836_vm5 = vcmp.eq.s32.totalorder %v39_v12, 1 }
  0xf3   :  { %167 = vadd.xlane.f32.xlu1 %v166_v24 }
  0xf4   :  { %217 = vrot.lane.b32.xlu0 %v163_v18, %s717_s2 }
 0x104   :  { %194 = vrot.lane.b32.xlu1 %v791_v15, %s717_s2 }
 0x15e   :  { %v193_v25 = vpop.permute.xlu0 %192 }
 0x15f   :  { %v198_v40 = vsel %vm146_vm2, %v193_v25, 0.0 }
 0x162   :  { %v216_v26 = vpop.permute.xlu0 %215 }
 0x163   :  { %v221_v28 = vsel %vm146_vm2, %v216_v26, 0.0 }
 0x166   :  { %v218_v27 = vpop.permute.xlu0 %217 }
 0x167   :  { %v222_v29 = vsel %vm146_vm2, %v218_v27, 0.0 }
 0x168   :  { %v223_v30 = vadd.f32 %v222_v29, %v221_v28 }
 0x16a   :  { %224 = vadd.xlane.f32.xlu1 %v223_v30 }
 0x17b   :  { %256 = vperm.xlu1 %656, %v788_v5  }
 0x17c   :  { %v151_v31 = vpop.xlane.xlu1 %150 }
 0x17d   :  { %v152_v32 = vrot.slane %v151_v31, 4 }
 0x17f   :  { %v153_v33 = vadd.f32 %v152_v32, %v151_v31  ;;  %657 = vset.pattern.permute.xlu1 %v719_v49 }
 0x180   :  { %v168_v34 = vpop.xlane.xlu1 %167  ;;  %262 = vperm.xlu1 %657, %v781_v3  }
 0x181   :  { %v154_v35 = vrot.slane %v153_v33, 2  ;;  %v169_v36 = vrot.slane %v168_v34, 4 }
 0x183   :  { %v170_v37 = vadd.f32 %v169_v36, %v168_v34  ;;  %v155_v38 = vadd.f32 %v154_v35, %v153_v33 }
 0x184   :  { %v195_v39 = vpop.permute.xlu1 %194  ;;  %266 = vperm.xlu1 %657, %v788_v5  }
 0x185   :  { %v171_v41 = vrot.slane %v170_v37, 2  ;;  %v199_v42 = vsel %vm146_vm2, %v195_v39, 0.0  ;;  %v156_v43 = vrot.slane %v155_v38, 1 }
 0x186   :  { %v200_v45 = vadd.f32 %v199_v42, %v198_v40 }
 0x187   :  { %v157_v46 = vadd.f32 %v156_v43, %v155_v38  ;;  %v172_v47 = vadd.f32 %v171_v41, %v170_v37  ;;  %v40_v43 = vand.u32 63, %v38_v11 }
 0x188   :  { %201 = vadd.xlane.f32.xlu0 %v200_v45  ;;  %658 = vset.pattern.permute.xlu1 %v720_v51 }
 0x189   :  { %614 = vpush %v157_v46  ;;  %v173_v48 = vrot.slane %v172_v47, 1  ;;  %284 = vperm.xlu1 %658, %v781_v3   ;;  %v275_v46 = vadd.s32 4294967295, %v40_v43 }
 0x18b   :  { %v174_v50 = vadd.f32 %v173_v48, %v172_v47  ;;  %vm276_vm6 = vcmp.ge.s32.totalorder %v275_v46, 0  ;;  %v311_v47 = vadd.s32 1, %v40_v43 }
 0x18d   :  { %616 = vpush %v174_v50  ;;  %288 = vperm.xlu1 %658, %v788_v5   ;;  %vm313_vm7 = vcmp.lt.s32.totalorder %v311_v47, 64  ;;  %v727_v47 = vmov 5  }
 0x191   :  { %659 = vset.pattern.permute.xlu1 %v721_v52 }
 0x192   :  { %296 = vperm.xlu1 %659, %v781_v3  }
 0x196   :  { %661 = vset.pattern.permute.xlu1 %v722_v55 }
 0x197   :  { %320 = vperm.xlu1 %661, %v781_v3  }
 0x19b   :  { %324 = vperm.xlu1 %661, %v788_v5  }
 0x19e   :  { %252 = vperm.xlu0 %655, %v781_v3  }
 0x19f   :  { %663 = vset.pattern.permute.xlu1 %v723_v56 }
 0x1a0   :  { %336 = vperm.xlu1 %663, %v788_v5  }
 0x1a2   :  { %660 = vset.pattern.permute.xlu0 %v721_v52 }
 0x1a3   :  { %300 = vperm.xlu0 %660, %v788_v5  }
 0x1a7   :  { %662 = vset.pattern.permute.xlu0 %v723_v56 }
 0x1a8   :  { %332 = vperm.xlu0 %662, %v781_v3  }
 0x1ba   :  { %s615_s10 = spop %614 }
 0x1bb   :  { %s823_s11 = smul.f32 0.0009765625, %s615_s10 }
 0x1bd   :  { %s179_s12 = smul.f32 %s823_s11, %s823_s11  ;;  %v186_v14 = vstv %s823_s11 }
 0x1be   :  { %s617_s13 = spop %616  ;;  %v187_v18 = vsel %vm831_vm4, %v186_v14, 0.0 }
 0x1bf   :  { %s178_s14 = smul.f32 0.0009765625, %s617_s13 }
 0x1c1   :  { %s180_s15 = ssub.f32 %s178_s14, %s179_s12 }
 0x1c3   :  { %s181_s16 = sadd.f32 1e-08, %s180_s15 }
 0x1c5   :  { %v182_v53 = vstv %s181_s16 }
 0x1c6   :  { %669 = vrsqrt.f32 %v182_v53 }
 0x1d0   :  { %v670_v54 = vpop.eup %669 }
 0x1d1   :  { %618 = vpush %v670_v54 }
 0x1f7   :  { %v225_v57 = vpop.xlane.xlu1 %224 }
 0x1f8   :  { %v226_v58 = vrot.slane %v225_v57, 4 }
 0x1fa   :  { %v227_v59 = vadd.f32 %v226_v58, %v225_v57 }
 0x1fb   :  { %v257_v23 = vpop.permute.xlu1 %256 }
 0x1fc   :  { %v228_v60 = vrot.slane %v227_v59, 2 }
 0x1fe   :  { %v229_v0 = vadd.f32 %v228_v60, %v227_v59 }
 0x1ff   :  { %v263_v25 = vpop.permute.xlu1 %262 }
 0x200   :  { %v230_v6 = vrot.slane %v229_v0, 1 }
 0x202   :  { %v231_v9 = vadd.f32 %v230_v6, %v229_v0  ;;  %s619_s17 = spop %618 }
 0x203   :  { %v188_v24 = vstv %s619_s17  ;;  %v267_v36 = vpop.permute.xlu1 %266 }
 0x204   :  { %v189_v26 = vsel %vm831_vm4, %v188_v24, 0.0 }
 0x215   :  { %v202_v61 = vpop.xlane.xlu0 %201 }
 0x216   :  { %v203_v62 = vrot.slane %v202_v61, 4 }
 0x218   :  { %v204_v63 = vadd.f32 %v203_v62, %v202_v61 }
 0x21a   :  { %v205_v1 = vrot.slane %v204_v63, 2 }
 0x21c   :  { %v206_v2 = vadd.f32 %v205_v1, %v204_v63 }
 0x21d   :  { %v253_v31 = vpop.permute.xlu0 %252 }
 0x21e   :  { %v207_v7 = vrot.slane %v206_v2, 1 }
 0x220   :  { %v208_v8 = vadd.f32 %v207_v7, %v206_v2  ;;  %v344_v2 = vstv %s588_s28 }
 0x222   :  { %620 = vpush %v208_v8  ;;  %v301_v41 = vpop.permute.xlu0 %300 }
 0x223   :  { %622 = vpush %v231_v9 }
 0x227   :  { %v333_v44 = vpop.permute.xlu0 %332 }
 0x253   :  { %s621_s18 = spop %620 }
 0x254   :  { %s212_s19 = smul.f32 0.0009765625, %s621_s18  ;;  %s623_s20 = spop %622 }
 0x255   :  { %s235_s21 = smul.f32 0.0009765625, %s623_s20 }
 0x256   :  { %s236_s22 = smul.f32 %s212_s19, %s212_s19  ;;  %v243_v19 = vstv %s212_s19 }
 0x257   :  { %v244_v20 = vsel %vm836_vm5, %v243_v19, %v187_v18 }
 0x258   :  { %s237_s23 = ssub.f32 %s235_s21, %s236_s22  ;;  %v248_v28 = vsub.f32 %v791_v15, %v244_v20  ;;  %v247_v29 = vsub.f32 %v793_v16, %v244_v20  ;;  %v285_v15 = vpop.permute.xlu1 %284 }
 0x25a   :  { %s238_s24 = sadd.f32 1e-08, %s237_s23 }
 0x25c   :  { %v239_v21 = vstv %s238_s24  ;;  %v289_v39 = vpop.permute.xlu1 %288  ;;  %s728_s24 = smov [#allocation5]  }
 0x25d   :  { %671 = vrsqrt.f32 %v239_v21 }
 0x260   :  { %v297_v16 = vpop.permute.xlu1 %296 }
 0x264   :  { %v321_v40 = vpop.permute.xlu1 %320 }
 0x267   :  { %v672_v22 = vpop.eup %671 }
 0x268   :  { %624 = vpush %v672_v22  ;;  %v325_v42 = vpop.permute.xlu1 %324 }
 0x26c   :  { %v337_v45 = vpop.permute.xlu1 %336 }
 0x299   :  { %s625_s25 = spop %624 }
 0x29a   :  { %v245_v27 = vstv %s625_s25  ;;  %s574_s25 = sshll.u32 %s728_s24, 4  ;;  %s575_s25 = int_to_ptr.vmem [resolvable:$true] %s574_s25 }
 0x29b   :  { %v246_v30 = vsel %vm836_vm5, %v245_v27, %v189_v26  ;;  %p694_p6 = scmp.lt.s32.totalorder %s575_s25, %s575_s25 }
 0x29c   :  { %v250_v32 = vmul.f32 %v248_v28, %v246_v30  ;;  %v249_v33 = vmul.f32 %v247_v29, %v246_v30 }
 0x29e   :  { %v260_v34 = vmul.f32 %v257_v23, %v250_v32  ;;  %v259_v35 = vmul.f32 %v253_v31, %v249_v33 }
 0x2a0   :  { %v269_v37 = vadd.f32 %v263_v25, %v259_v35  ;;  %v270_v38 = vadd.f32 %v267_v36, %v260_v34 }
 0x2a2   :  { %273 = vrot.lane.b32.xlu1 %v270_v38, %s724_s26  ;;  %271 = vrot.lane.b32.xlu0 %v269_v37, %s724_s26  ;;  %v304_v54 = vmul.f32 %v301_v41, %v270_v38  ;;  %v303_v55 = vmul.f32 %v297_v16, %v269_v37  ;;  %s689_s26 = scalar_lea.vmem %s575_s25, 256 }
 0x2a3   :  { %p690_p5 = scmp.ne.s32.totalorder %s575_s25, %s689_s26  ;;  %p695_p7 = scmp.lt.s32.totalorder %s689_s26, %s689_s26 }
 0x2a5   :  { %p696_p8 = por %p695_p7, %p694_p6 }
 0x2a6   :  { %307 = vrot.lane.b32.xlu1 %v269_v37, %s725_s27  ;;  %309 = vrot.lane.b32.xlu0 %v270_v38, %s725_s27 }
 0x2a7   :  { %p697_p9 = pnand %p696_p8, %p690_p5 }
 0x314   :  { %v274_v48 = vpop.permute.xlu1 %273  ;;  %v272_v49 = vpop.permute.xlu0 %271 }
 0x315   :  { %v282_v50 = vsel %vm276_vm6, %v274_v48, 0.0  ;;  %v281_v51 = vsel %vm276_vm6, %v272_v49, 0.0 }
 0x316   :  { %v292_v52 = vmul.f32 %v289_v39, %v282_v50  ;;  %v291_v53 = vmul.f32 %v285_v15, %v281_v51 }
 0x318   :  { %v308_v56 = vpop.permute.xlu1 %307  ;;  %v310_v57 = vpop.permute.xlu0 %309  ;;  %v306_v60 = vadd.f32 %v304_v54, %v292_v52  ;;  %v305_v61 = vadd.f32 %v303_v55, %v291_v53 }
 0x319   :  { %v317_v58 = vsel %vm313_vm7, %v308_v56, 0.0  ;;  %v318_v59 = vsel %vm313_vm7, %v310_v57, 0.0 }
 0x31a   :  { %v327_v62 = vmul.f32 %v321_v40, %v317_v58  ;;  %v328_v63 = vmul.f32 %v325_v42, %v318_v59  ;;  %v726_v42 = vmov 4  }
 0x31b   :  { %665 = vset.pattern.permute.xlu1 %v726_v42  ;;  %664 = vset.pattern.permute.xlu0 %v726_v42 }
 0x31c   :  { %v329_v0 = vadd.f32 %v327_v62, %v305_v61  ;;  %v330_v1 = vadd.f32 %v328_v63, %v306_v60 }
 0x31e   :  { %v339_v6 = vadd.f32 %v333_v44, %v329_v0  ;;  %v340_v7 = vadd.f32 %v337_v45, %v330_v1  ;;  %v471_v1 = vld [vmem:[%s922_s3] sm:$0xff] }
 0x31f   :  { %607 = vmatprep.mubr.msk.f32.mxu1 %vm485_vm10, %v471_v1 }
 0x320   :  { %vm343_vm8 = vcmp.gt.f32.partialorder %v340_v7, 0.0  ;;  %v346_v8 = vmul.f32 %v344_v2, %v340_v7  ;;  %vm342_vm9 = vcmp.gt.f32.partialorder %v339_v6, 0.0  ;;  %v345_v9 = vmul.f32 %v344_v2, %v339_v6  ;;  %v473_v2 = vld [vmem:[%s923_s4] sm:$0xff] }
 0x322   :  { %v850_v10 = vsel %vm343_vm8, %v340_v7, %v346_v8  ;;  %v852_v11 = vsel %vm342_vm9, %v339_v6, %v345_v9  ;;  %v474_v6 = vld [vmem:[%s923_s4 + $0x8] sm:$0xff] }
 0x323   :  { %395 = vrot.lane.b32.xlu1 %v850_v10, %s717_s2  ;;  %393 = vrot.lane.b32.xlu0 %v852_v11, %s717_s2  ;;  %v364_v12 = vmul.f32 %v852_v11, %v852_v11  ;;  %v365_v14 = vmul.f32 %v850_v10, %v850_v10  ;;  %v349_v21 = vsel %vm146_vm2, %v852_v11, 0.0  ;;  %v350_v22 = vsel %vm146_vm2, %v850_v10, 0.0 }
 0x324   :  { %v351_v23 = vadd.f32 %v350_v22, %v349_v21 }
 0x325   :  { %v366_v18 = vsel %vm146_vm2, %v364_v12, 0.0  ;;  %v367_v19 = vsel %vm146_vm2, %v365_v14, 0.0 }
 0x326   :  { %v368_v20 = vadd.f32 %v367_v19, %v366_v18 }
 0x342   :  { %369 = vadd.xlane.f32.xlu0 %v368_v20 }
 0x347   :  { %352 = vadd.xlane.f32.xlu1 %v351_v23 }
 0x358   :  { %418 = vrot.lane.b32.xlu0 %v365_v14, %s717_s2  ;;  %416 = vrot.lane.b32.xlu1 %v364_v12, %s717_s2 }
 0x395   :  { %v396_v24 = vpop.permute.xlu1 %395  ;;  %v394_v25 = vpop.permute.xlu0 %393 }
 0x396   :  { %v400_v26 = vsel %vm146_vm2, %v396_v24, 0.0  ;;  %v399_v27 = vsel %vm146_vm2, %v394_v25, 0.0 }
 0x397   :  { %v401_v28 = vadd.f32 %v400_v26, %v399_v27 }
 0x399   :  { %402 = vadd.xlane.f32.xlu1 %v401_v28 }
 0x3aa   :  { %456 = vperm.xlu1 %665, %v788_v5  }
 0x3ae   :  { %666 = vset.pattern.permute.xlu1 %v727_v47 }
 0x3af   :  { %462 = vperm.xlu1 %666, %v781_v3  }
 0x3b3   :  { %466 = vperm.xlu1 %666, %v788_v5  }
 0x3b7   :  { %667 = vset.pattern.permute.xlu1 %v716_v4 }
 0x3b8   :  { %477 = vperm.xlu1 %667, %v473_v2  }
 0x3bc   :  { %482 = vperm.xlu1 %667, %v474_v6  }
 0x3cf   :  { %v370_v29 = vpop.xlane.xlu0 %369 }
 0x3d0   :  { %v371_v30 = vrot.slane %v370_v29, 4 }
 0x3d2   :  { %v372_v31 = vadd.f32 %v371_v30, %v370_v29 }
 0x3d3   :  { %v419_v35 = vpop.permute.xlu0 %418 }
 0x3d4   :  { %v373_v32 = vrot.slane %v372_v31, 2  ;;  %v353_v33 = vpop.xlane.xlu1 %352  ;;  %v423_v15 = vsel %vm146_vm2, %v419_v35, 0.0 }
 0x3d5   :  { %v354_v34 = vrot.slane %v353_v33, 4 }
 0x3d6   :  { %v374_v38 = vadd.f32 %v373_v32, %v372_v31 }
 0x3d7   :  { %v355_v36 = vadd.f32 %v354_v34, %v353_v33 }
 0x3d8   :  { %v417_v37 = vpop.permute.xlu1 %416  ;;  %v375_v43 = vrot.slane %v374_v38, 1 }
 0x3d9   :  { %v356_v39 = vrot.slane %v355_v36, 2  ;;  %v422_v16 = vsel %vm146_vm2, %v417_v37, 0.0 }
 0x3da   :  { %v424_v40 = vadd.f32 %v423_v15, %v422_v16  ;;  %v376_v46 = vadd.f32 %v375_v43, %v374_v38 }
 0x3db   :  { %v357_v41 = vadd.f32 %v356_v39, %v355_v36 }
 0x3dc   :  { %425 = vadd.xlane.f32.xlu0 %v424_v40 }
 0x3dd   :  { %v358_v44 = vrot.slane %v357_v41, 1 }
 0x3df   :  { %v359_v45 = vadd.f32 %v358_v44, %v357_v41 }
 0x3e1   :  { %626 = vpush %v359_v45 }
 0x3e2   :  { %628 = vpush %v376_v46 }
 0x3f2   :  { %452 = vperm.xlu0 %664, %v781_v3  }
 0x3f6   :  { %668 = vset.pattern.permute.xlu0 %v716_v4 }
 0x412   :  { %s627_s29 = spop %626 }
 0x413   :  { %s363_s5 = smul.f32 0.0009765625, %s627_s29  ;;  %s629_s30 = spop %628 }
 0x414   :  { %s380_s7 = smul.f32 0.0009765625, %s629_s30 }
 0x415   :  { %s381_s8 = smul.f32 %s363_s5, %s363_s5  ;;  %v387_v4 = vstv %s363_s5 }
 0x416   :  { %v388_v55 = vsel %vm831_vm4, %v387_v4, 0.0 }
 0x417   :  { %s382_s0 = ssub.f32 %s380_s7, %s381_s8 }
 0x419   :  { %s383_s9 = sadd.f32 1e-08, %s382_s0 }
 0x41b   :  { %v384_v48 = vstv %s383_s9 }
 0x41c   :  { %673 = vrsqrt.f32 %v384_v48 }
 0x426   :  { %v674_v49 = vpop.eup %673  ;;  %v403_v50 = vpop.xlane.xlu1 %402 }
 0x427   :  { %v404_v51 = vrot.slane %v403_v50, 4  ;;  %630 = vpush %v674_v49 }
 0x429   :  { %v405_v5 = vadd.f32 %v404_v51, %v403_v50 }
 0x42a   :  { %v457_v9 = vpop.permute.xlu1 %456 }
 0x42b   :  { %v406_v52 = vrot.slane %v405_v5, 2 }
 0x42d   :  { %v407_v3 = vadd.f32 %v406_v52, %v405_v5 }
 0x42e   :  { %v463_v14 = vpop.permute.xlu1 %462 }
 0x42f   :  { %v408_v53 = vrot.slane %v407_v3, 1 }
 0x431   :  { %v409_v54 = vadd.f32 %v408_v53, %v407_v3 }
 0x432   :  { %v467_v28 = vpop.permute.xlu1 %466 }
 0x433   :  { %632 = vpush %v409_v54 }
 0x458   :  { %s880_s1 = spop %630 }
 0x459   :  { %v389_v12 = vstv %s880_s1 }
 0x45a   :  { %v390_v18 = vsel %vm831_vm4, %v389_v12, 0.0 }
 0x464   :  { %s633_s2 = spop %632 }
 0x465   :  { %s413_s10 = smul.f32 0.0009765625, %s633_s2 }
 0x467   :  { %v443_v56 = vstv %s413_s10  ;;  %s437_s17 = smul.f32 %s413_s10, %s413_s10 }
 0x468   :  { %v444_v57 = vsel %vm836_vm5, %v443_v56, %v388_v55 }
 0x469   :  { %v426_v58 = vpop.xlane.xlu0 %425  ;;  %v448_v20 = vsub.f32 %v850_v10, %v444_v57  ;;  %v447_v21 = vsub.f32 %v852_v11, %v444_v57  ;;  %v478_v10 = vpop.permute.xlu1 %477 }
 0x46a   :  { %v427_v59 = vrot.slane %v426_v58, 4 }
 0x46c   :  { %v428_v60 = vadd.f32 %v427_v59, %v426_v58 }
 0x46d   :  { %v483_v17 = vpop.permute.xlu1 %482 }
 0x46e   :  { %v429_v61 = vrot.slane %v428_v60, 2 }
 0x470   :  { %v430_v62 = vadd.f32 %v429_v61, %v428_v60 }
 0x471   :  { %v453_v23 = vpop.permute.xlu0 %452 }
 0x472   :  { %v431_v63 = vrot.slane %v430_v62, 1 }
 0x474   :  { %v432_v0 = vadd.f32 %v431_v63, %v430_v62 }
 0x476   :  { %634 = vpush %v432_v0 }
 0x4a7   :  { %s635_s18 = spop %634 }
 0x4a8   :  { %s436_s19 = smul.f32 0.0009765625, %s635_s18 }
 0x4aa   :  { %s438_s20 = ssub.f32 %s436_s19, %s437_s17 }
 0x4ac   :  { %s439_s21 = sadd.f32 1e-08, %s438_s20 }
 0x4ae   :  { %v440_v7 = vstv %s439_s21 }
 0x4af   :  { %675 = vrsqrt.f32 %v440_v7 }
 0x4b9   :  { %v676_v8 = vpop.eup %675 }
 0x4ba   :  { %636 = vpush %v676_v8 }
 0x4eb   :  { %s637_s22 = spop %636 }
 0x4ec   :  { %v445_v19 = vstv %s637_s22 }
 0x4ed   :  { %v446_v22 = vsel %vm836_vm5, %v445_v19, %v390_v18 }
 0x4ee   :  { %v450_v24 = vmul.f32 %v448_v20, %v446_v22  ;;  %v449_v25 = vmul.f32 %v447_v21, %v446_v22 }
 0x4f0   :  { %v460_v26 = vmul.f32 %v457_v9, %v450_v24  ;;  %v459_v27 = vmul.f32 %v453_v23, %v449_v25 }
 0x4f2   :  { %v470_v29 = vadd.f32 %v467_v28, %v460_v26  ;;  %v469_v30 = vadd.f32 %v463_v14, %v459_v27 }
 0x4f4   :  { %v610_v31 = vpack.c.bf16 %v470_v29, %v469_v30 }
 0x4f6   :  { %611 = vmatprep.subr.bf16.mxu1 %v610_v31 }
 0x4f7   :  { %613 = vmatpush3.bf16.msra.mxu1 %v610_v31 }
 0x4fa   :  { %608 = vmatmul.mubr.msk.f32.vlgmr.msra.gmra.mrb[0].mxu1 %vm485_vm10, %v472_v13 }
 0x5cd   :  { %v609_v11 = vpop.f32.mrb[0].mxu1 }
 0x5ce   :  { %v564_v32 = vadd.f32 %v609_v11, %v483_v17  ;;  %v558_v33 = vpop.f32.mrb[1].mxu1 }
 0x5cf   :  { %v559_v34 = vadd.f32 %v558_v33, %v478_v10 }
 0x5d0   :  { %568 = vst [vmem:[#allocation5 + $0x8] sm:$0xff] %v564_v32 }
 0x5d1   :  { %567 = vst [vmem:[#allocation5] sm:$0xff] %v559_v34 }
 0x5d2   :  { %700 = shalt.err (!%p697_p9)
}
 0x5d3   :  { %s701_s28 = scalar_lea.hbm %s925_s6, 256 }
 0x5d4   :  { %p702_p10 = scmp.ne.s32.totalorder %s925_s6, %s701_s28  ;;  %p705_p11 = scmp.lt.u32.totalorder %s701_s28, %s925_s6 }
 0x5d6   :  { %p707_p12 = pnand %p705_p11, %p702_p10 }
 0x5d8   :  { %710 = shalt.err (!%p707_p12)
}
 0x5d9   :  { %s729_s8 = smov 128   ;;  %s730_s0 = smov 8  }
 0x5da   :  { %580 = dma.vmem_to_hbm [thread:$0]  %s575_s25, 256, %s925_s6, [#allocation3], %s729_s8, %s729_s8, %s730_s0  }
 0x5db   :  { %713 = dma.done.wait [#allocation3], 256  }
 0x5dc   :  { %714 = vsyncadd [#allocation3], 4294967040 }
 0x5dd   :  { %584 = vsyncpa [#allocation3], 1 }
 0x5de   :  { %585 = vsyncpa [#allocation4], 1 }

</bundles_post_ra>
